<compile_context>
chip_gen: v7x
topology: tpu7x:2x2x1
jax: 0.10.0
libtpu: 0.0.40
codegen_flags: <defaults>
</compile_context>

<pallas_src>
import jax
import jax.numpy as jnp
from jax.experimental import pallas as pl
from jax.experimental.pallas import tpu as pltpu


def _round_up(n, m):
    return ((n + m - 1) // m) * m


def _clf_kernel(x_ref, w_ref, b_ref, o_ref):
    # logits = x @ W_t + b ; W_t is pre-transposed to (in_dim, out_pad), so this
    # lowers to a plain (M,K)x(K,N) MXU contraction with no in-kernel transpose.
    logits = jnp.dot(
        x_ref[...], w_ref[...], preferred_element_type=jnp.float32
    ) + b_ref[...]

    # Numerically stable softmax over the (padded) class axis. Padded lanes have
    # zero weights and bias -1e30, so exp(logit - m) underflows to exactly 0 and
    # they contribute nothing to the denominator (no Inf/NaN paths).
    m = jnp.max(logits, axis=-1, keepdims=True)
    e = jnp.exp(logits - m)
    denom = jnp.sum(e, axis=-1, keepdims=True)
    # Exact divide: denom is a (TB, 1) column, so exactness is essentially free
    # and keeps each row summing to 1 to fp32 accuracy.
    probs = e / denom

    # Store only the real classes -> no 128-lane-padded HBM writes and no
    # separate wrapper slice pass over the output.
    o_ref[...] = probs[:, : o_ref.shape[-1]].astype(o_ref.dtype)


def clf_forward(x, weight, bias, *, block_b=4096, out_dtype=jnp.float32):
    """Pallas equivalent of Clf.forward: softmax(x @ W^T + b, dim=-1).

    Args:
      x:      (B, 32)        float32
      weight: (out_dim, 32)  float32   (native PyTorch nn.Linear layout)
      bias:   (out_dim,)     float32
      block_b: batch tile size (rows per grid step).
      out_dtype: output dtype (jnp.bfloat16 halves output HBM traffic).
    Returns:
      (B, out_dim) probabilities.
    """
    B, in_dim = x.shape
    out_dim, w_in = weight.shape
    assert w_in == in_dim, "weight in_dim mismatch"

    # One-time XLA-side transpose + lane padding of the weight; the padded
    # columns get zero weights and a large finite negative bias.
    out_pad = _round_up(max(out_dim, 128), 128)
    w_t = (
        jnp.zeros((in_dim, out_pad), jnp.float32)
        .at[:, :out_dim]
        .set(weight.astype(jnp.float32).T)
    )
    b_p = jnp.full((1, out_pad), -1e30, dtype=jnp.float32)
    b_p = b_p.at[0, :out_dim].set(bias.astype(jnp.float32))

    # Batch tile. Real VMEM cost per step (double-buffered):
    #   x tile:       TB * 128 lanes * 4 B   (last dim 32 is lane-padded to 128)
    #   logits/probs: TB * out_pad * 4 B     (in-register / scratch)
    #   out tile:     TB * out_dim * 4 B
    # block_b=4096 (~8 MiB total) is safe under v5e's 16 MiB default scoped
    # VMEM; raise to 8192 on v6e/v7x if desired (32 MiB scoped), keeping
    # >= 2 tiles per TensorCore on v7x so megacore sharding has work to split.
    TB = min(block_b, _round_up(B, 8))
    grid = (pl.cdiv(B, TB),)  # no jnp.pad of x: partial last block is masked

    out = pl.pallas_call(
        _clf_kernel,
        out_shape=jax.ShapeDtypeStruct((B, out_dim), out_dtype),
        grid=grid,
        in_specs=[
            pl.BlockSpec((TB, in_dim), lambda i: (i, 0)),        # x tile
            pl.BlockSpec((in_dim, out_pad), lambda i: (0, 0)),   # W^T (resident)
            pl.BlockSpec((1, out_pad), lambda i: (0, 0)),        # bias (resident)
        ],
        out_specs=pl.BlockSpec((TB, out_dim), lambda i: (i, 0)),
        compiler_params=pltpu.CompilerParams(
            dimension_semantics=("parallel",),  # split batch tiles across v7x TCs
        ),
    )(x.astype(jnp.float32), w_t, b_p)

    return out


if __name__ == "__main__":
    key = jax.random.PRNGKey(0)
    k_x, k_w, k_b = jax.random.split(key, 3)

    B = 8
    in_dim = 32   # fixed by the module (Linear(32, output_dim))
    out_dim = 4   # output_dim

    x = jax.random.normal(k_x, (B, in_dim), dtype=jnp.float32)
    # Deterministic "PyTorch-style" init: U(-1/sqrt(in_dim), 1/sqrt(in_dim))
    bound = 1.0 / jnp.sqrt(jnp.float32(in_dim))
    weight = jax.random.uniform(k_w, (out_dim, in_dim), jnp.float32, -bound, bound)
    bias = jax.random.uniform(k_b, (out_dim,), jnp.float32, -bound, bound)

    out = clf_forward(x, weight, bias)
    out = jax.block_until_ready(out)

    # Reference check in plain JAX.
    ref = jax.nn.softmax(x @ weight.T + bias, axis=-1)
    assert out.shape == (B, out_dim), f"bad output shape {out.shape}"
    assert jnp.allclose(out, ref, atol=1e-3, rtol=1e-3), "mismatch vs reference"
    assert jnp.allclose(jnp.sum(out, axis=-1), 1.0, atol=1e-5), "softmax rows must sum to 1"

    print("KERNEL_OK")
</pallas_src>

<mosaic_0001>
module attributes {stable_mosaic.version = 11 : i64} {
  func.func @_clf_kernel(%arg0: i32, %arg1: memref<8x32xf32, #tpu.memory_space<vmem>>, %arg2: memref<32x128xf32, #tpu.memory_space<vmem>>, %arg3: memref<1x128xf32, #tpu.memory_space<vmem>>, %arg4: memref<8x4xf32, #tpu.memory_space<vmem>>) attributes {dimension_semantics = [#tpu.dimension_semantics<parallel>], iteration_bounds = array<i64: 1>, scalar_prefetch = 0 : i64, scratch_operands = 0 : i64, tpu.core_type = #tpu.core_type<tc>, window_params = [{transform_indices = @transform_0, window_bounds = array<i64: 8, 32>}, {pipeline_mode = #tpu.pipeline_mode<synchronous>, transform_indices = @transform_1, window_bounds = array<i64: 32, 128>}, {pipeline_mode = #tpu.pipeline_mode<synchronous>, transform_indices = @transform_2, window_bounds = array<i64: 1, 128>}, {transform_indices = @transform_3, window_bounds = array<i64: 8, 4>}]} {
    %c0 = arith.constant 0 : index
    %c0_0 = arith.constant 0 : index
    %0 = vector.load %arg1[%c0, %c0_0] : memref<8x32xf32, #tpu.memory_space<vmem>>, vector<8x32xf32>
    %c0_1 = arith.constant 0 : index
    %c0_2 = arith.constant 0 : index
    %1 = vector.load %arg2[%c0_1, %c0_2] : memref<32x128xf32, #tpu.memory_space<vmem>>, vector<32x128xf32>
    %cst = arith.constant dense<0.000000e+00> : vector<8x128xf32>
    %2 = tpu.matmul %0, %1, %cst {dimension_numbers = #tpu.dot_dimension_numbers<[1], [0], [0], [1], [0, 0, 1, 1], [], []>} : vector<8x32xf32>, vector<32x128xf32>, vector<8x128xf32> -> vector<8x128xf32>
    %c0_3 = arith.constant 0 : index
    %c0_4 = arith.constant 0 : index
    %3 = vector.load %arg3[%c0_3, %c0_4] : memref<1x128xf32, #tpu.memory_space<vmem>>, vector<1x128xf32>
    %4 = vector.broadcast %3 : vector<1x128xf32> to vector<8x128xf32>
    %5 = arith.addf %2, %4 : vector<8x128xf32>
    %cst_5 = arith.constant dense<0xFF800000> : vector<8xf32>
    %6 = vector.multi_reduction <maximumf>, %5, %cst_5 [1] : vector<8x128xf32> to vector<8xf32>
    %7 = vector.shape_cast %6 : vector<8xf32> to vector<8x1xf32>
    %8 = vector.broadcast %7 : vector<8x1xf32> to vector<8x128xf32>
    %9 = arith.subf %5, %8 : vector<8x128xf32>
    %10 = math.exp %9 : vector<8x128xf32>
    %cst_6 = arith.constant dense<0.000000e+00> : vector<8xf32>
    %11 = vector.multi_reduction <add>, %10, %cst_6 [1] : vector<8x128xf32> to vector<8xf32>
    %12 = vector.shape_cast %11 : vector<8xf32> to vector<8x1xf32>
    %13 = vector.broadcast %12 : vector<8x1xf32> to vector<8x128xf32>
    %14 = arith.divf %10, %13 : vector<8x128xf32>
    %15 = vector.extract_strided_slice %14 {offsets = [0, 0], sizes = [8, 4], strides = [1, 1]} : vector<8x128xf32> to vector<8x4xf32>
    %c0_7 = arith.constant 0 : index
    %c0_8 = arith.constant 0 : index
    %16 = vector.load %arg4[%c0_7, %c0_8] : memref<8x4xf32, #tpu.memory_space<vmem>>, vector<8x4xf32>
    tpu.vector_store %arg4[%c0_7, %c0_8], %15 {strides = array<i32>} : memref<8x4xf32, #tpu.memory_space<vmem>>, vector<8x4xf32>,
    return
  }
  func.func @transform_0(%arg0: i32) -> (i32, i32) {
    %c0_i32 = arith.constant 0 : i32
    %c0_i32_0 = arith.constant 0 : i32
    return %arg0, %c0_i32 : i32, i32
  }
  func.func @transform_1(%arg0: i32) -> (i32, i32) {
    %c0_i32 = arith.constant 0 : i32
    %c0_i32_0 = arith.constant 0 : i32
    %c0_i32_1 = arith.constant 0 : i32
    return %c0_i32, %c0_i32_0 : i32, i32
  }
  func.func @transform_2(%arg0: i32) -> (i32, i32) {
    %c0_i32 = arith.constant 0 : i32
    %c0_i32_0 = arith.constant 0 : i32
    %c0_i32_1 = arith.constant 0 : i32
    return %c0_i32, %c0_i32_0 : i32, i32
  }
  func.func @transform_3(%arg0: i32) -> (i32, i32) {
    %c0_i32 = arith.constant 0 : i32
    %c0_i32_0 = arith.constant 0 : i32
    return %arg0, %c0_i32 : i32, i32
  }
}

</mosaic_0001>

<bundles_post_ra>
// kernel: tpu_custom_call.1
= control target key start
LH: loop header
LB: loop body
LE: loop exit
PB: predicated region body
PF: predicated region fallthrough
CT: control target
= control target key end

     0   :  { %8 = vsyncpa [#allocation3], 0  ;;  %s290_s0 = inlined_call_operand.hbm [shape: f32[8,32], index: 0, kind: input, shape index: {}]   ;;  %s291_s1 = inlined_call_operand.hbm [shape: f32[32,128], index: 1, kind: input, shape index: {}]   ;;  %s292_s2 = inlined_call_operand.vmem [shape: f32[1,128], index: 2, kind: input, shape index: {}]   ;;  %s293_s3 = inlined_call_operand.vmem [shape: f32[8,4], index: 3, kind: output, shape index: {}]  }
   0x1   :  { %9 = vsyncpa [#allocation5], 0  ;;  %s226_s12 = smov [#allocation2]   ;;  %s227_s14 = smov [#allocation4]  }
   0x2   :  { %s16_s13 = sshll.u32 %s226_s12, 4  ;;  %s25_s15 = sshll.u32 %s227_s14, 4  ;;  %s17_s13 = int_to_ptr.vmem [resolvable:$true] %s16_s13  ;;  %s253_s15 = int_to_ptr.vmem [resolvable:$true] %s25_s15 }
   0x3   :  { %s178_s18 = scalar_lea.hbm %s290_s0, 128 }
   0x4   :  { %p179_p0 = scmp.ne.s32.totalorder %s290_s0, %s178_s18  ;;  %p182_p1 = scmp.lt.u32.totalorder %s178_s18, %s290_s0 }
   0x6   :  { %p184_p2 = pnand %p182_p1, %p179_p0 }
   0x8   :  { %187 = shalt.err (!%p184_p2)
}
   0x9   :  { %s188_s23 = scalar_lea.vmem %s17_s13, 128  ;;  %p193_p4 = scmp.lt.s32.totalorder %s17_s13, %s17_s13 }
   0xa   :  { %p189_p3 = scmp.ne.s32.totalorder %s17_s13, %s188_s23  ;;  %p194_p5 = scmp.lt.s32.totalorder %s188_s23, %s188_s23 }
   0xc   :  { %p195_p6 = por %p194_p5, %p193_p4 }
   0xe   :  { %p196_p7 = pnand %p195_p6, %p189_p3 }
  0x10   :  { %199 = shalt.err (!%p196_p7)
}
  0x11   :  { %19 = dma.hbm_to_vmem [thread:$0]  %s290_s0, 128, %s17_s13, [#allocation3]  }
  0x12   :  { %s200_s28 = scalar_lea.hbm %s291_s1, 512 }
  0x13   :  { %p201_p8 = scmp.ne.s32.totalorder %s291_s1, %s200_s28  ;;  %p204_p9 = scmp.lt.u32.totalorder %s200_s28, %s291_s1 }
  0x15   :  { %p206_p10 = pnand %p204_p9, %p201_p8 }
  0x17   :  { %209 = shalt.err (!%p206_p10)
}
  0x18   :  { %s210_s6 = scalar_lea.vmem %s253_s15, 512  ;;  %p215_p12 = scmp.lt.s32.totalorder %s253_s15, %s253_s15 }
  0x19   :  { %p211_p11 = scmp.ne.s32.totalorder %s253_s15, %s210_s6  ;;  %p216_p13 = scmp.lt.s32.totalorder %s210_s6, %s210_s6 }
  0x1b   :  { %p217_p0 = por %p216_p13, %p215_p12 }
  0x1d   :  { %p218_p1 = pnand %p217_p0, %p211_p11 }
  0x1f   :  { %221 = shalt.err (!%p218_p1)
}
  0x20   :  { %s228_s0 = smov 128   ;;  %s229_s7 = smov 8  }
  0x21   :  { %31 = dma.hbm_to_vmem [thread:$0]  %s291_s1, 512, %s253_s15, [#allocation5], %s228_s0, %s228_s0, %s229_s7  }
  0x22   :  { %222 = dma.done.wait [#allocation3], 128  }
  0x23   :  { %223 = vsyncadd [#allocation3], 4294967168 }
  0x24   :  { %224 = dma.done.wait [#allocation5], 512  }
  0x25   :  { %225 = vsyncadd [#allocation5], 4294966784  ;;  %v230_v0 = vmov 0.0|0.0   ;;  %vm231_vm0 = vmmov 0   ;;  %v232_v1 = vmov 0.0   ;;  %v41_v2 = vld [vmem:[#allocation4] sm:$0xff] }
  0x26   :  { %161 = vmatprep.subr.bf16.mxu0 %v230_v0  ;;  %158 = vmatprep.mubr.msk.f32.mxu0 %vm231_vm0, %v232_v1  ;;  %v42_v3 = vld [vmem:[#allocation4 + $0x8] sm:$0xff]  ;;  %v43_v4 = vld [vmem:[#allocation4 + $0x10] sm:$0xff]  ;;  %v44_v6 = vld [vmem:[#allocation4 + $0x18] sm:$0xff]  ;;  %vm52_vm1 = vcmask 261120   ;;  %vm135_vm2 = vcmask 31744  }
  0x27   :  { %v162_v5 = vpack.c.bf16 %v42_v3, %v41_v2  ;;  %v165_v7 = vpack.c.bf16 %v44_v6, %v43_v4  ;;  %v40_v8 = vld [vmem:[#allocation2] sm:$0xff]  ;;  %v143_v9 = vld [vmem:[%s292_s2] ss:$0 sm:$0xff] }
  0x29   :  { %163 = vmatpush3.bf16.msra.mxu0 %v162_v5 }
  0x2a   :  { %164 = vmatprep.subr.bf16.mxu0 %v230_v0 }
  0x2d   :  { %166 = vmatpush3.bf16.msra.mxu0 %v165_v7 }
  0x30   :  { %159 = vmatmul.mubr.msk.f32.vlgmr.msra.gmra.mrb[0].mxu0 %vm52_vm1, %v40_v8 }
 0x103   :  { %v122_v10 = vpop.f32.mrb[0].mxu0 }
 0x104   :  { %v123_v11 = vadd.f32 %v143_v9, %v122_v10  ;;  %v160_v12 = vpop.f32.mrb[1].mxu0 }
 0x106   :  { %126 = vmax.xlane.f32.xlu0 %v123_v11 }
 0x193   :  { %v127_v13 = vpop.xlane.xlu0 %126 }
 0x194   :  { %v128_v14 = vsub.f32 %v123_v11, %v127_v13 }
 0x196   :  { %v129_v15 = vmul.f32 1.442695, %v128_v14 }
 0x198   :  { %174 = vpow2.f32 %v129_v15 }
 0x1a2   :  { %v175_v16 = vpop.eup %174 }
 0x1a3   :  { %131 = vadd.xlane.f32.xlu0 %v175_v16 }
 0x230   :  { %v132_v17 = vpop.xlane.xlu0 %131 }
 0x231   :  { %176 = vrcp.f32 %v132_v17 }
 0x23b   :  { %v177_v18 = vpop.eup %176 }
 0x23c   :  { %v134_v19 = vmul.f32 %v177_v18, %v175_v16 }
 0x23e   :  { %136 = vst.msk [vmem:[%s293_s3] sm:$0xff] %vm135_vm2, %v134_v19 }
 0x23f   :  { %141 = vsyncpa [#allocation3], 1 }
 0x240   :  { %142 = vsyncpa [#allocation5], 1 }

</bundles_post_ra>
